<compile_context>
chip_gen: v5e
topology: v5e:2x2
jax: 0.10.0
libtpu: 0.0.40
codegen_flags: <defaults>
</compile_context>

<pallas_src>
import jax
import jax.numpy as jnp
from jax.experimental import pallas as pl
from jax.experimental.pallas import tpu as pltpu

BN_EPS = 1e-5


def decoder_kernel(x_ref, w_ref, o_ref, m_ref, l_ref):
    # x_ref: (B, T) bf16, w_ref: (T, TV) bf16, o_ref: (B, TV) f32
    # m_ref / l_ref: (B, 1) f32 scratch carrying the online softmax state.
    p = pl.program_id(0)   # 0: stats pass, 1: write pass
    j = pl.program_id(1)   # vocab tile index

    # ---- recomputed in both passes (K = num_topics is tiny) ----------------
    # bf16 x bf16 on the MXU, f32 accumulate.
    logits = jnp.dot(x_ref[...], w_ref[...],
                     preferred_element_type=jnp.float32)          # (B, TV) f32

    # BatchNorm1d(affine=False): per-column batch mean / biased var, eps=1e-5.
    # Both reductions read `logits` directly (no centered intermediate) and the
    # (1, TV) vectors are computed once, then one fused sub+mul per element.
    inv_b = 1.0 / logits.shape[0]
    mean = jnp.sum(logits, axis=0, keepdims=True) * inv_b         # (1, TV)
    ex2 = jnp.sum(logits * logits, axis=0, keepdims=True) * inv_b # (1, TV)
    var = ex2 - mean * mean
    inv_std = jax.lax.rsqrt(var + BN_EPS)                         # (1, TV)
    normed = (logits - mean) * inv_std                            # (B, TV)

    # ---- pass 0: online row-max / row-sum-of-exp across vocab tiles --------
    @pl.when(jnp.logical_and(p == 0, j == 0))
    def _init():
        m_ref[...] = jnp.full(m_ref.shape, -jnp.inf, m_ref.dtype)
        l_ref[...] = jnp.zeros(l_ref.shape, l_ref.dtype)

    @pl.when(p == 0)
    def _stats():
        tile_max = jnp.max(normed, axis=1, keepdims=True)         # (B, 1)
        m_new = jnp.maximum(m_ref[...], tile_max)
        alpha = jnp.exp(m_ref[...] - m_new)                       # exp(-inf)=0 at j==0
        tile_sum = jnp.sum(jnp.exp(normed - m_new), axis=1, keepdims=True)
        l_ref[...] = alpha * l_ref[...] + tile_sum
        m_ref[...] = m_new

    # ---- pass 1: normalize and write the output tile -----------------------
    @pl.when(p == 1)
    def _write():
        inv_l = pl.reciprocal(l_ref[...], approx=True)            # (B, 1), EUP
        o_ref[...] = (jnp.exp(normed - m_ref[...]) * inv_l).astype(o_ref.dtype)


def decoder_network_forward(x, beta_weight_t, *, tile_v=512):
    """x: (B, num_topics) f32; beta_weight_t: (num_topics, vocab) f32
    (pre-transposed nn.Linear weight so the output is lane-dense on vocab)."""
    B, T = x.shape
    T2, V = beta_weight_t.shape
    assert T == T2
    tile_v = min(tile_v, V)
    assert tile_v % 128 == 0 and V % tile_v == 0, (
        "vocab must be a multiple of the (128-aligned) vocab tile")
    n_v = V // tile_v

    # bf16 storage halves weight HBM/DMA bytes and VMEM footprint; MXU takes
    # bf16 natively and the kernel accumulates in f32.
    x_bf16 = x.astype(jnp.bfloat16)
    w_bf16 = beta_weight_t.astype(jnp.bfloat16)

    return pl.pallas_call(
        decoder_kernel,
        out_shape=jax.ShapeDtypeStruct((B, V), jnp.float32),
        grid_spec=pltpu.PrefetchScalarGridSpec(
            num_scalar_prefetch=0,
            grid=(2, n_v),                      # (pass, vocab tile)
            in_specs=[
                # x: constant block index -> loaded once, stays VMEM-resident.
                pl.BlockSpec((B, T), lambda p, j: (0, 0)),
                # weight: streamed one vocab tile at a time (double-buffered).
                pl.BlockSpec((T, tile_v), lambda p, j: (0, j)),
            ],
            # Output index is pinned to tile 0 during the stats pass (p == 0),
            # so no HBM write-back happens until the write pass produces real
            # data; during p == 1 it walks the vocab tiles monotonically.
            out_specs=pl.BlockSpec((B, tile_v), lambda p, j: (0, j * p)),
            scratch_shapes=[
                pltpu.VMEM((B, 1), jnp.float32),   # running row max m
                pltpu.VMEM((B, 1), jnp.float32),   # running row sum-of-exp l
            ],
        ),
        compiler_params=pltpu.CompilerParams(
            # Both axes carry the (m, l) online-softmax state -> sequential.
            dimension_semantics=("arbitrary", "arbitrary"),
            # Explicit budget with headroom; safe on v5e/v6e (128 MiB physical)
            # and v7x (64 MiB). For production shapes, size tile_v so that
            # 2*(T*tile_v*2 + B*tile_v*4) + B*T*2 stays well under this.
            vmem_limit_bytes=32 * 1024 * 1024,
        ),
    )(x_bf16, w_bf16)


def reference_forward(x, beta_weight_t):
    # Mirrors the kernel's bf16 operand storage (f32 accumulate / f32 math).
    xb = x.astype(jnp.bfloat16).astype(jnp.float32)
    wb = beta_weight_t.astype(jnp.bfloat16).astype(jnp.float32)
    logits = xb @ wb
    mean = jnp.mean(logits, axis=0, keepdims=True)
    var = jnp.mean((logits - mean) ** 2, axis=0, keepdims=True)
    normed = (logits - mean) / jnp.sqrt(var + BN_EPS)
    return jax.nn.softmax(normed, axis=1)


if __name__ == "__main__":
    # Small shapes consistent with the module: batch=8 docs, num_topics=32,
    # vocab=512 split into 4 vocab tiles of 128 to exercise the tiled path.
    batch, num_topics, vocab_size = 8, 32, 512

    key = jax.random.PRNGKey(0)
    kx, kw = jax.random.split(key)

    x = jax.random.normal(kx, (batch, num_topics), dtype=jnp.float32)

    # nn.Linear(num_topics, vocab_size, bias=False) default init:
    # weight (vocab, topics) ~ U(-1/sqrt(num_topics), 1/sqrt(num_topics)).
    bound = 1.0 / (num_topics ** 0.5)
    beta_weight = jax.random.uniform(
        kw, (vocab_size, num_topics), dtype=jnp.float32,
        minval=-bound, maxval=bound)
    beta_weight_t = beta_weight.T  # (num_topics, vocab) -> lane-dense output

    out = decoder_network_forward(x, beta_weight_t, tile_v=128)
    out = jax.block_until_ready(out)

    ref = reference_forward(x, beta_weight_t)
    assert out.shape == (batch, vocab_size)
    # approx reciprocal + bf16 operands -> slightly relaxed tolerances.
    assert jnp.allclose(jnp.sum(out, axis=1), 1.0, atol=3e-3)
    assert jnp.allclose(out, ref, atol=2e-3, rtol=2e-2)

    print("KERNEL_OK")
</pallas_src>

<mosaic_0001>
module attributes {stable_mosaic.version = 11 : i64} {
  func.func @decoder_kernel(%arg0: i32, %arg1: i32, %arg2: memref<8x32xbf16, #tpu.memory_space<vmem>>, %arg3: memref<32x128xbf16, #tpu.memory_space<vmem>>, %arg4: memref<8x128xf32, #tpu.memory_space<vmem>>, %arg5: memref<8x1xf32, #tpu.memory_space<vmem>>, %arg6: memref<8x1xf32, #tpu.memory_space<vmem>>) attributes {dimension_semantics = [#tpu.dimension_semantics<arbitrary>, #tpu.dimension_semantics<arbitrary>], iteration_bounds = array<i64: 2, 4>, scalar_prefetch = 0 : i64, scratch_operands = 2 : i64, tpu.core_type = #tpu.core_type<tc>, window_params = [{pipeline_mode = #tpu.pipeline_mode<synchronous>, transform_indices = @transform_0, window_bounds = array<i64: 8, 32>}, {transform_indices = @transform_1, window_bounds = array<i64: 32, 128>}, {transform_indices = @transform_2, window_bounds = array<i64: 8, 128>}]} {
    %c0 = arith.constant 0 : index
    %c0_0 = arith.constant 0 : index
    %0 = vector.load %arg2[%c0, %c0_0] : memref<8x32xbf16, #tpu.memory_space<vmem>>, vector<8x32xbf16>
    %c0_1 = arith.constant 0 : index
    %c0_2 = arith.constant 0 : index
    %1 = vector.load %arg3[%c0_1, %c0_2] : memref<32x128xbf16, #tpu.memory_space<vmem>>, vector<32x128xbf16>
    %cst = arith.constant dense<0.000000e+00> : vector<8x128xf32>
    %2 = tpu.matmul %0, %1, %cst {dimension_numbers = #tpu.dot_dimension_numbers<[1], [0], [0], [1], [0, 0, 1, 1], [], []>} : vector<8x32xbf16>, vector<32x128xbf16>, vector<8x128xf32> -> vector<8x128xf32>
    %cst_3 = arith.constant dense<0.000000e+00> : vector<128xf32>
    %3 = vector.multi_reduction <add>, %2, %cst_3 [0] : vector<8x128xf32> to vector<128xf32>
    %4 = vector.shape_cast %3 : vector<128xf32> to vector<1x128xf32>
    %cst_4 = arith.constant 1.250000e-01 : f32
    %5 = vector.broadcast %cst_4 : f32 to vector<1x128xf32>
    %6 = arith.mulf %4, %5 : vector<1x128xf32>
    %7 = arith.mulf %2, %2 : vector<8x128xf32>
    %cst_5 = arith.constant dense<0.000000e+00> : vector<128xf32>
    %8 = vector.multi_reduction <add>, %7, %cst_5 [0] : vector<8x128xf32> to vector<128xf32>
    %9 = vector.shape_cast %8 : vector<128xf32> to vector<1x128xf32>
    %cst_6 = arith.constant 1.250000e-01 : f32
    %10 = vector.broadcast %cst_6 : f32 to vector<1x128xf32>
    %11 = arith.mulf %9, %10 : vector<1x128xf32>
    %12 = arith.mulf %6, %6 : vector<1x128xf32>
    %13 = arith.subf %11, %12 : vector<1x128xf32>
    %cst_7 = arith.constant 9.99999974E-6 : f32
    %14 = vector.broadcast %cst_7 : f32 to vector<1x128xf32>
    %15 = arith.addf %13, %14 : vector<1x128xf32>
    %16 = math.rsqrt %15 : vector<1x128xf32>
    %17 = vector.broadcast %6 : vector<1x128xf32> to vector<8x128xf32>
    %18 = arith.subf %2, %17 : vector<8x128xf32>
    %19 = vector.broadcast %16 : vector<1x128xf32> to vector<8x128xf32>
    %20 = arith.mulf %18, %19 : vector<8x128xf32>
    %c0_i32 = arith.constant 0 : i32
    %21 = arith.cmpi eq, %arg0, %c0_i32 : i32
    %c0_i32_8 = arith.constant 0 : i32
    %22 = arith.cmpi eq, %arg1, %c0_i32_8 : i32
    %23 = arith.andi %21, %22 : i1
    %24 = arith.extui %23 : i1 to i32
    %c0_i32_9 = arith.constant 0 : i32
    %25 = arith.cmpi ne, %24, %c0_i32_9 : i32
    scf.if %25 {
      %cst_13 = arith.constant 0xFF800000 : f32
      %32 = vector.broadcast %cst_13 : f32 to vector<8x1xf32>
      %c0_14 = arith.constant 0 : index
      %c0_15 = arith.constant 0 : index
      %33 = vector.load %arg5[%c0_14, %c0_15] : memref<8x1xf32, #tpu.memory_space<vmem>>, vector<8x1xf32>
      tpu.vector_store %arg5[%c0_14, %c0_15], %32 {strides = array<i32>} : memref<8x1xf32, #tpu.memory_space<vmem>>, vector<8x1xf32>,
      %cst_16 = arith.constant 0.000000e+00 : f32
      %34 = vector.broadcast %cst_16 : f32 to vector<8x1xf32>
      %c0_17 = arith.constant 0 : index
      %c0_18 = arith.constant 0 : index
      %35 = vector.load %arg6[%c0_17, %c0_18] : memref<8x1xf32, #tpu.memory_space<vmem>>, vector<8x1xf32>
      tpu.vector_store %arg6[%c0_17, %c0_18], %34 {strides = array<i32>} : memref<8x1xf32, #tpu.memory_space<vmem>>, vector<8x1xf32>,
    } else {
    }
    %c0_i32_10 = arith.constant 0 : i32
    %26 = arith.cmpi eq, %arg0, %c0_i32_10 : i32
    %27 = arith.extui %26 : i1 to i32
    %c0_i32_11 = arith.constant 0 : i32
    %28 = arith.cmpi ne, %27, %c0_i32_11 : i32
    scf.if %28 {
      %cst_13 = arith.constant dense<0xFF800000> : vector<8xf32>
      %32 = vector.multi_reduction <maximumf>, %20, %cst_13 [1] : vector<8x128xf32> to vector<8xf32>
      %33 = vector.shape_cast %32 : vector<8xf32> to vector<8x1xf32>
      %c0_14 = arith.constant 0 : index
      %c0_15 = arith.constant 0 : index
      %34 = vector.load %arg5[%c0_14, %c0_15] : memref<8x1xf32, #tpu.memory_space<vmem>>, vector<8x1xf32>
      %35 = arith.maximumf %34, %33 : vector<8x1xf32>
      %c0_16 = arith.constant 0 : index
      %c0_17 = arith.constant 0 : index
      %36 = vector.load %arg5[%c0_16, %c0_17] : memref<8x1xf32, #tpu.memory_space<vmem>>, vector<8x1xf32>
      %37 = arith.subf %36, %35 : vector<8x1xf32>
      %38 = math.exp %37 : vector<8x1xf32>
      %39 = vector.broadcast %35 : vector<8x1xf32> to vector<8x128xf32>
      %40 = arith.subf %20, %39 : vector<8x128xf32>
      %41 = math.exp %40 : vector<8x128xf32>
      %cst_18 = arith.constant dense<0.000000e+00> : vector<8xf32>
      %42 = vector.multi_reduction <add>, %41, %cst_18 [1] : vector<8x128xf32> to vector<8xf32>
      %43 = vector.shape_cast %42 : vector<8xf32> to vector<8x1xf32>
      %c0_19 = arith.constant 0 : index
      %c0_20 = arith.constant 0 : index
      %44 = vector.load %arg6[%c0_19, %c0_20] : memref<8x1xf32, #tpu.memory_space<vmem>>, vector<8x1xf32>
      %45 = arith.mulf %38, %44 : vector<8x1xf32>
      %46 = arith.addf %45, %43 : vector<8x1xf32>
      %c0_21 = arith.constant 0 : index
      %c0_22 = arith.constant 0 : index
      %47 = vector.load %arg6[%c0_21, %c0_22] : memref<8x1xf32, #tpu.memory_space<vmem>>, vector<8x1xf32>
      tpu.vector_store %arg6[%c0_21, %c0_22], %46 {strides = array<i32>} : memref<8x1xf32, #tpu.memory_space<vmem>>, vector<8x1xf32>,
      %c0_23 = arith.constant 0 : index
      %c0_24 = arith.constant 0 : index
      %48 = vector.load %arg5[%c0_23, %c0_24] : memref<8x1xf32, #tpu.memory_space<vmem>>, vector<8x1xf32>
      tpu.vector_store %arg5[%c0_23, %c0_24], %35 {strides = array<i32>} : memref<8x1xf32, #tpu.memory_space<vmem>>, vector<8x1xf32>,
    } else {
    }
    %c1_i32 = arith.constant 1 : i32
    %29 = arith.cmpi eq, %arg0, %c1_i32 : i32
    %30 = arith.extui %29 : i1 to i32
    %c0_i32_12 = arith.constant 0 : i32
    %31 = arith.cmpi ne, %30, %c0_i32_12 : i32
    scf.if %31 {
      %c0_13 = arith.constant 0 : index
      %c0_14 = arith.constant 0 : index
      %32 = vector.load %arg6[%c0_13, %c0_14] : memref<8x1xf32, #tpu.memory_space<vmem>>, vector<8x1xf32>
      %33 = tpu.reciprocal %32 {approx = true} : vector<8x1xf32> -> vector<8x1xf32>
      %c0_15 = arith.constant 0 : index
      %c0_16 = arith.constant 0 : index
      %34 = vector.load %arg5[%c0_15, %c0_16] : memref<8x1xf32, #tpu.memory_space<vmem>>, vector<8x1xf32>
      %35 = vector.broadcast %34 : vector<8x1xf32> to vector<8x128xf32>
      %36 = arith.subf %20, %35 : vector<8x128xf32>
      %37 = math.exp %36 : vector<8x128xf32>
      %38 = vector.broadcast %33 : vector<8x1xf32> to vector<8x128xf32>
      %39 = arith.mulf %37, %38 : vector<8x128xf32>
      %c0_17 = arith.constant 0 : index
      %c0_18 = arith.constant 0 : index
      %40 = vector.load %arg4[%c0_17, %c0_18] : memref<8x128xf32, #tpu.memory_space<vmem>>, vector<8x128xf32>
      tpu.vector_store %arg4[%c0_17, %c0_18], %39 {strides = array<i32>} : memref<8x128xf32, #tpu.memory_space<vmem>>, vector<8x128xf32>,
    } else {
    }
    return
  }
  func.func @transform_0(%arg0: i32, %arg1: i32) -> (i32, i32) {
    %c0_i32 = arith.constant 0 : i32
    %c0_i32_0 = arith.constant 0 : i32
    %c0_i32_1 = arith.constant 0 : i32
    return %c0_i32, %c0_i32_0 : i32, i32
  }
  func.func @transform_1(%arg0: i32, %arg1: i32) -> (i32, i32) {
    %c0_i32 = arith.constant 0 : i32
    %c0_i32_0 = arith.constant 0 : i32
    return %c0_i32, %arg1 : i32, i32
  }
  func.func @transform_2(%arg0: i32, %arg1: i32) -> (i32, i32) {
    %0 = arith.muli %arg1, %arg0 : i32
    %c0_i32 = arith.constant 0 : i32
    %c0_i32_0 = arith.constant 0 : i32
    return %c0_i32, %0 : i32, i32
  }
}

</mosaic_0001>

<bundles_post_ra>
// kernel: tpu_custom_call.1
= control target key start
LH: loop header
LB: loop body
LE: loop exit
PB: predicated region body
PF: predicated region fallthrough
CT: control target
= control target key end

     0   :  { %s1020_s0 = inlined_call_operand.hbm [shape: bf16[8,32], index: 0, kind: input, shape index: {}]   ;;  %s1021_s1 = inlined_call_operand.hbm [shape: bf16[32,512], index: 1, kind: input, shape index: {}]   ;;  %s1022_s2 = inlined_call_operand.hbm [shape: f32[8,512], index: 2, kind: output, shape index: {}]  }
   0x1   :  { %1029 = sst [smem:[#allocation18_spill]] %s1020_s0 }
   0x2   :  { %1030 = sst [smem:[#allocation19_spill]] %s1021_s1 }
   0x3   :  { %7 = vsyncpa [#allocation5], 0 }
   0x4   :  { %8 = vsyncpa [#allocation8], 0 }
   0x5   :  { %10 = vsyncpa [#allocation8 + $0x1], 0 }
   0x6   :  { %11 = vsyncpa [#allocation6], 0 }
   0x7   :  { %13 = vsyncpa [#allocation6 + $0x1], 0  ;;  %s796_s9 = smov 0   ;;  %s798_s10 = smov 0  }
   0x8   :  { %s800_s11 = smov 0   ;;  %s802_s12 = smov 0  }
   0x9   :  { %s804_s13 = smov 0   ;;  %s806_s14 = smov 0  }
   0xa   :  { %s808_s15 = smov 0   ;;  %s810_s16 = smov 0  }
   0xb   :  { %s812_s17 = smov 0   ;;  %s814_s18 = smov 0  }
   0xc   :  { %s816_s19 = smov 0  }
   0xd LB: > { %1031 = sst [smem:[#allocation13_spill]] %s731_s9  ;;  %s425_s20 = sadd.s32 4294967295, %s771_s19   ;;  %s771_s19 = sphi %s816_s19, %s19_s19   ;;  %s767_s18 = sphi %s814_s18, %s1060_s18   ;;  %s763_s17 = sphi %s812_s17, %s1059_s17   ;;  %s759_s16 = sphi %s810_s16, %s1051_s16   ;;  %s755_s15 = sphi %s808_s15, %s1050_s15   ;;  %s751_s14 = sphi %s806_s14, %s1058_s14   ;;  %s747_s13 = sphi %s804_s13, %s1057_s13   ;;  %s743_s12 = sphi %s802_s12, %s1056_s12   ;;  %s739_s11 = sphi %s800_s11, %s1055_s11   ;;  %s735_s10 = sphi %s798_s10, %s1054_s10   ;;  %s731_s9 = sphi %s796_s9, %s1053_s9  }
   0xe   : > { %1032 = sst [smem:[#allocation14_spill]] %s763_s17  ;;  %s426_s21 = sadd.s32 4294967294, %s771_s19  }
   0xf   : > { %1033 = sst [smem:[#allocation15_spill]] %s767_s18  ;;  %s59_s22 = sadd.s32 1, %s751_s14 }
  0x10   : > { %1034 = sst [smem:[#allocation16_spill]] %s771_s19  ;;  %p66_p0 = scmp.ne.s32.totalorder %s751_s14, %s747_s13 }
  0x11   : > { %p67_p1 = scmp.eq.s32.totalorder %s771_s19, 0  ;;  %p72_p2 = scmp.ne.s32.totalorder %s747_s13, %s743_s12 }
  0x12   : > { %p856_p3 = scmp.eq.s32.totalorder %s425_s20, 0  ;;  %p97_p5 = scmp.ne.s32.totalorder %s739_s11, %s735_s10 }
  0x13   : > { %p861_p4 = por %p67_p1, %p66_p0  ;;  %p98_p7 = scmp.eq.s32.totalorder %s425_s20, 7 }
  0x14   : > { %p869_p6 = por %p856_p3, %p72_p2  ;;  %p103_p8 = scmp.ne.s32.totalorder %s735_s10, %s731_s9 }
  0x15   : > { %p104_p9 = scmp.eq.s32.totalorder %s426_s21, 7  ;;  %p875_p10 = por %p98_p7, %p97_p5 }
  0x16   : > { %p427_p11 = scmp.ge.s32.totalorder %s771_s19, 1  ;;  %p111_p13 = scmp.lt.s32.totalorder %s771_s19, 9 }
  0x17   : > { %p880_p12 = por %p104_p9, %p103_p8  ;;  %s1041_s0 = sld [smem:[#allocation18_spill]] }
  0x18   : > { %p888_p0 = pnand %p427_p11, %p111_p13  ;;  %s773_s5 = smov [#allocation4]  }
  0x19   : > { %s1039_s28 = scalar_select %p880_p12, 1, 0 }
  0x1a   : > { %p461_p1 = pneg %p888_p0  ;;  %s125_s6 = sshll.u32 %s773_s5, 4  ;;  %s126_s6 = int_to_ptr.vmem [resolvable:$true] %s125_s6 }
  0x1b   : > { %1040 = sst [smem:[#allocation17_spill]] %s1039_s28  ;;  %p474_p2 = scmp.lt.s32.totalorder %s771_s19, 8 }
  0x1c   : > { %p462_p5 = pnand %p461_p1, %p856_p3  ;;  %s28_s8 = sadd.s32 1, %s763_s17 }
  0x1d   : > { %s123_s3 = sshll.u32 %s1041_s0, 4  ;;  %p899_p7 = pnand %p474_p2, %p861_p4  ;;  %s124_s3 = int_to_ptr.hbm [resolvable:$true] %s123_s3 }
  0x1e   : > { %464 = dma.hbm_to_vmem [thread:$0]  (!%p462_p5), %s124_s3, 64, %s126_s6, [#allocation5]  }
  0x1f   : > { %s31_s12 = sadd.s32 1, %s767_s18  ;;  %p29_p8 = scmp.ge.s32.totalorder %s28_s8, 4 }
  0x20   : > { %s82_s20 = smul.u32 %s763_s17, %s767_s18  ;;  %s136_s21 = sand.u32 1, %s751_s14  }
  0x21   : > { %s431_s29 = sshll.u32 %s763_s17, 2  ;;  %s1062_s8 = smov (%p29_p8, %s28_s8), 0 }
  0x22   : > { %s1064_s12 = smov (!%p29_p8, %s31_s12), %s767_s18  ;;  %s56_s25 = ssub.s32 %s763_s17, %s1062_s8 }
  0x23   : > { %p33_p4 = scmp.ge.s32.totalorder %s1064_s12, 2  ;;  %p57_p9 = scmp.eq.s32.totalorder %s56_s25, 0 }
  0x24   : > { %s430_s30 = sshll.u32 %s136_s21, 4  ;;  %s1044_s1 = sld [smem:[#allocation19_spill]] }
  0x25   : > { %s1066_s12 = smov (%p33_p4, %s1064_s12), 0  ;;  %s140_s18 = scalar_lea.vmem [#allocation7], %s430_s30 }
  0x26   : > { %s922_s6 = scalar_select %p57_p9, %s751_s14, %s59_s22  }
  0x27   : > { %s83_s0 = smul.u32 %s1066_s12, %s1062_s8  ;;  %s147_s9 = sshll.u32 %s140_s18, 4  ;;  %s148_s9 = int_to_ptr.vmem [resolvable:$true] %s147_s9 }
  0x28   : > { %s1045_s25 = sadd.s32 1, %s739_s11  ;;  %s137_s24 = scalar_lea.sflag [#allocation8], %s136_s21 }
  0x29   : > { %s84_s19 = ssub.s32 %s82_s20, %s83_s0  ;;  %s775_s5 = smov 64  }
  0x2a   : > { %s144_s3 = scalar_lea.hbm %s1044_s1, %s431_s29  ;;  %p85_p11 = scmp.eq.s32.totalorder %s84_s19, 0 }
  0x2b   : > { %s145_s28 = sshll.u32 %s144_s3, 4  ;;  %s774_s29 = smov 256   ;;  %s146_s28 = int_to_ptr.hbm [resolvable:$true] %s145_s28 }
  0x2c   : > { %s929_s17 = scalar_select %p85_p11, %s739_s11, %s1045_s25  }
  0x2d   : > { %s776_s1 = smov 4   ;;  %159 = sbr.rel (%p888_p0) target bundleno = 756 (0x2f4), region = 28 }
  0x2e   : > { %468 = dma.hbm_to_vmem [thread:$0]  (!%p899_p7), %s146_s28, 256, %s148_s9, %s137_s24, %s774_s29, %s775_s5, %s776_s1  }
  0x32   : > { %718 = dma.done.wait (%p856_p3), [#allocation5], 64  }
  0x33   : > { %720 = vsyncadd (%p856_p3), [#allocation5], 4294967232  ;;  %s166_s0 = sand.u32 1, %s747_s13  }
  0x34   : > { %s434_s18 = sshll.u32 %s166_s0, 4  ;;  %s167_s19 = scalar_lea.sflag [#allocation8], %s166_s0 }
  0x35   : > { %s170_s22 = scalar_lea.vmem [#allocation7], %s434_s18 }
  0x36   : > { %722 = dma.done.wait (%p869_p6), %s167_s19, 256  }
  0x37   : > { %724 = vsyncadd (%p869_p6), %s167_s19, 4294967040  ;;  %s189_s1 = sand.u32 1, %s735_s10   ;;  %v452_v0 = vld [vmem:[%s170_s22 + $0x8] sm:$0xff]  ;;  %v451_v1 = vld [vmem:[%s170_s22] sm:$0xff]  ;;  %vm211_vm0 = vcmask 261120   ;;  %p258_p3 = scmp.eq.s32.totalorder %s759_s16, 0 }
  0x38   : > { %s947_s9 = sshll.u32 %s189_s1, 3  ;;  %221 = vmatpush.bf16.msra.mxu0 %v452_v0  ;;  %v194_v2 = vld [vmem:[#allocation4] sm:$0xf]  ;;  %p259_p13 = scmp.eq.s32.totalorder %s755_s15, 0 }
  0x39   : > { %s191_s26 = scalar_lea.vmem [#allocation9], %s947_s9 }
  0x3a   : > { %p951_p0 = pnand %p259_p13, %p258_p3 }
  0x3c   : > { %222 = vmatpush.bf16.msra.mxu0 %v451_v1 }
  0x3f   : > { %444 = vmatmul.msk.bf16.vlgmr.msra.gmra.mxu0 %vm211_vm0, %v194_v2 }
  0xbc   : > { %v224_v3 = vpop.f32.mrf.mxu0 }
  0xbd   : > { %v228_v4 = vrot.slane %v224_v3, 4  ;;  %v235_v5 = vmul.f32 %v224_v3, %v224_v3 }
  0xbf   : > { %v229_v6 = vadd.f32 %v228_v4, %v224_v3  ;;  %v236_v7 = vrot.slane %v235_v5, 4 }
  0xc1   : > { %v230_v8 = vrot.slane %v229_v6, 2  ;;  %v237_v9 = vadd.f32 %v236_v7, %v235_v5 }
  0xc3   : > { %v231_v10 = vadd.f32 %v230_v8, %v229_v6  ;;  %v238_v11 = vrot.slane %v237_v9, 2 }
  0xc4   : > { %v226_v12 = vpop.f32.mrf.mxu0 }
  0xc5   : > { %v232_v13 = vrot.slane %v231_v10, 1  ;;  %v239_v14 = vadd.f32 %v238_v11, %v237_v9 }
  0xc7   : > { %v233_v15 = vadd.f32 %v232_v13, %v231_v10  ;;  %v240_v16 = vrot.slane %v239_v14, 1 }
  0xc9   : > { %v234_v17 = vmul.f32 0.125, %v233_v15  ;;  %v241_v18 = vadd.f32 %v240_v16, %v239_v14 }
  0xcb   : > { %v242_v19 = vmul.f32 0.125, %v241_v18  ;;  %v243_v20 = vmul.f32 %v234_v17, %v234_v17  ;;  %v256_v29 = vsub.f32 %v224_v3, %v234_v17 }
  0xcd   : > { %v244_v21 = vsub.f32 %v242_v19, %v243_v20 }
  0xcf   : > { %v245_v22 = vadd.f32 1e-05, %v244_v21 }
  0xd1   : > { %573 = vrsqrt.f32 %v245_v22  ;;  %vm252_vm2 = vweird.f32 %v245_v22 }
  0xd7   : > { %v574_v23 = vpop.eup %573 }
  0xd8   : > { %v247_v24 = vmul.f32 %v574_v23, %v245_v22  ;;  %vm253_vm1 = vweird.f32 %v574_v23 }
  0xd9   : > { %vm254_vm3 = vmor %vm252_vm2, %vm253_vm1 }
  0xda   : > { %v248_v25 = vmul.f32 %v574_v23, %v247_v24 }
  0xdc   : > { %v249_v26 = vmul.f32 0.5, %v248_v25 }
  0xde   : > { %v250_v27 = vsub.f32 1.5, %v249_v26 }
  0xdf   : > { %263 = sbr.rel (%p951_p0) target bundleno = 231 (0xe7), region = 40 }
  0xe0   : > { %v251_v28 = vmul.f32 %v574_v23, %v250_v27 }
  0xe2   : > { %v255_v30 = vsel %vm254_vm3, %v574_v23, %v251_v28 }
  0xe3   : > { %v257_v31 = vmul.f32 %v256_v29, %v255_v30 }
  0xe4   : > { %vm264_vm4 = vcmask 7168   ;;  %v777_v32 = vmov -inf   ;;  %v778_v33 = vmov 0.0  }
  0xe5   : > { %265 = vst.msk [vmem:[#allocation2] sm:$0xff] %vm264_vm4, %v777_v32 }
  0xe6   : > { %266 = vst.msk [vmem:[#allocation3] sm:$0xff] %vm264_vm4, %v778_v33 }
  0xe7 PF: > { %p445_p6 = scmp.ne.s32.totalorder %s759_s16, 0 }
  0xe9   : > { %269 = sbr.rel (%p445_p6) target bundleno = 601 (0x259), region = 44 }
  0xee   : > { %270 = vmax.xlane.f32.xlu0 %v257_v31  ;;  %v779_v34 = vmov 0   ;;  %v272_v35 = vld [vmem:[#allocation2] sm:$0xff]  ;;  %vm290_vm5 = vcmask 7168   ;;  %v287_v45 = vld [vmem:[#allocation3] sm:$0xff] }
  0xef   : > { %575 = vset.pattern.permute.xlu0 %v779_v34 }
 0x161   : > { %v271_v36 = vpop.xlane.xlu0 %270 }
 0x162   : > { %v273_v37 = vmax.f32 %v272_v35, %v271_v36 }
 0x164   : > { %v274_v38 = vsub.f32 %v272_v35, %v273_v37  ;;  %292 = vst.msk [vmem:[#allocation2] sm:$0xff] %vm290_vm5, %v273_v37  ;;  %279 = vperm.xlu0 %575, %v273_v37  }
 0x166   : > { %v275_v43 = vmul.f32 1.442695, %v274_v38 }
 0x1d6   : > { %v280_v39 = vpop.permute.xlu0 %279 }
 0x1d7   : > { %v282_v40 = vsub.f32 %v257_v31, %v280_v39 }
 0x1d9   : > { %v283_v41 = vmul.f32 1.442695, %v282_v40 }
 0x1db   : > { %576 = vpow2.f32 %v283_v41 }
 0x1dc   : > { %578 = vpow2.f32 %v275_v43 }
 0x1e1   : > { %v577_v42 = vpop.eup %576 }
 0x1e2   : > { %285 = vadd.xlane.f32.xlu1 %v577_v42  ;;  %v579_v44 = vpop.eup %578 }
 0x1e3   : > { %v288_v46 = vmul.f32 %v579_v44, %v287_v45 }
 0x255   : > { %v286_v47 = vpop.xlane.xlu1 %285 }
 0x256   : > { %v289_v48 = vadd.f32 %v288_v46, %v286_v47 }
 0x258   : > { %291 = vst.msk [vmem:[#allocation3] sm:$0xff] %vm290_vm5, %v289_v48 }
 0x259 PF: > { %p446_p1 = scmp.ne.s32.totalorder %s759_s16, 1 }
 0x25b   : > { %296 = sbr.rel (%p446_p1) target bundleno = 739 (0x2e3), region = 48 }
 0x260   : > { %v299_v49 = vld [vmem:[#allocation2] sm:$0xff]  ;;  %v297_v50 = vld [vmem:[#allocation3] sm:$0xff]  ;;  %v780_v51 = vmov 0  }
 0x261   : > { %580 = vset.pattern.permute.xlu0 %v780_v51  ;;  %581 = vrcp.f32 %v297_v50 }
 0x262   : > { %302 = vperm.xlu0 %580, %v299_v49  }
 0x267   : > { %v582_v52 = vpop.eup %581 }
 0x26a   : > { %310 = vperm.xlu0 %580, %v582_v52  }
 0x2d4   : > { %v303_v53 = vpop.permute.xlu0 %302 }
 0x2d5   : > { %v305_v54 = vsub.f32 %v257_v31, %v303_v53 }
 0x2d7   : > { %v306_v55 = vmul.f32 1.442695, %v305_v54 }
 0x2d9   : > { %583 = vpow2.f32 %v306_v55 }
 0x2dc   : > { %v311_v57 = vpop.permute.xlu0 %310 }
 0x2df   : > { %v584_v56 = vpop.eup %583 }
 0x2e0   : > { %v313_v58 = vmul.f32 %v584_v56, %v311_v57 }
 0x2e2   : > { %314 = vst [vmem:[%s191_s26] sm:$0xff] %v313_v58 }
 0x2e3 PF: > { %s323_s28 = smul.u32 %s755_s15, %s759_s16  ;;  %s329_s4 = sshll.u32 %s191_s26, 4  ;;  %s330_s4 = int_to_ptr.vmem [resolvable:$true] %s329_s4 }
 0x2e4   : > { %s316_s25 = scalar_lea.sflag [#allocation6], %s189_s1  ;;  %s665_s5 = scalar_lea.hbm %s1022_s2, 32 }
 0x2e5   : > { %s448_s7 = sshll.u32 %s323_s28, 3 }
 0x2e6   : > { %s327_s30 = scalar_lea.hbm %s1022_s2, %s448_s7 }
 0x2e7   : > { %s331_s3 = sshll.u32 %s327_s30, 4  ;;  %s332_s3 = int_to_ptr.hbm [resolvable:$true] %s331_s3 }
 0x2e8   : > { %s659_s24 = sshra.s32 %s332_s3, 4  ;;  %s660_s24 = int_to_ptr.hbm [resolvable:$true] %s659_s24 }
 0x2e9   : > { %s661_s29 = scalar_lea.hbm %s660_s24, 8  ;;  %p666_p8 = scmp.lt.s32.totalorder %s660_s24, %s1022_s2 }
 0x2ea   : > { %p662_p2 = scmp.ne.s32.totalorder %s660_s24, %s661_s29  ;;  %p667_p4 = scmp.lt.s32.totalorder %s665_s5, %s661_s29 }
 0x2ec   : > { %p663_p5 = pnand %p662_p2, %p875_p10  ;;  %p668_p9 = por %p667_p4, %p666_p8 }
 0x2ee   : > { %p664_p7 = pneg %p663_p5 }
 0x2f0   : > { %p669_p11 = pnand %p668_p9, %p664_p7 }
 0x2f2   : > { %672 = shalt.err (!%p669_p11)
}
 0x2f3   : > { %459 = dma.vmem_to_hbm [thread:$0]  (%p875_p10), %s330_s4, 128, %s332_s3, %s316_s25  }
 0x2f4 PF: > { %s1047_s19 = sld [smem:[#allocation16_spill]] }
 0x2f5   : > { %s1048_s22 = sld [smem:[#allocation13_spill]] }
 0x2fa   : > { %p476_p3 = scmp.ge.s32.totalorder %s1047_s19, 2 }
 0x2fb   : > { %s343_s9 = sand.u32 1, %s1048_s22  }
 0x2fc   : > { %p470_p13 = pnand %p476_p3, %p880_p12  ;;  %s344_s23 = scalar_lea.sflag [#allocation6], %s343_s9 }
 0x2fe   : > { %p471_p0 = pneg %p470_p13 }
 0x300   : > { %726 = dma.done.wait (%p471_p0), %s344_s23, 128  }
 0x301   : > { %728 = vsyncadd (%p471_p0), %s344_s23, 4294967168  ;;  %s19_s19 = sadd.s32 1, %s1047_s19   ;;  %s1050_s15 = sld [smem:[#allocation14_spill]] }
 0x302   : > { %p16_p6 = scmp.ge.s32.totalorder %s19_s19, 10   ;;  %s1051_s16 = sld [smem:[#allocation15_spill]] }
 0x303   : > { %s1052_s27 = smov %s1066_s12  ;;  %s1053_s9 = smov %s735_s10 }
 0x304   : > { %s1054_s10 = smov %s739_s11  ;;  %s1055_s11 = smov %s929_s17 }
 0x305   : > { %s1056_s12 = smov %s747_s13  ;;  %s1057_s13 = smov %s751_s14 }
 0x306   : > { %s1058_s14 = smov %s922_s6  ;;  %s1059_s17 = smov %s1062_s8 }
 0x307   : > { %s1060_s18 = smov %s1052_s27  ;;  %18 = sbr.rel (!%p16_p6) target bundleno = 13 (0xd), region = 90 }
 0x30c   :  { %350 = vsyncpa [#allocation5], 1 }
 0x30d   :  { %352 = vsyncpa [#allocation5 + $0x1], 1 }
 0x30e   :  { %353 = vsyncpa [#allocation8], 1 }
 0x30f   :  { %355 = vsyncpa [#allocation8 + $0x1], 1 }
 0x310   :  { %356 = vsyncpa [#allocation6], 1 }
 0x311   :  { %358 = vsyncpa [#allocation6 + $0x1], 1 }

</bundles_post_ra>
